<compile_context>
chip_gen: v6e
topology: v6e:2x2x1
jax: 0.10.0
libtpu: 0.0.40
codegen_flags: <defaults>
</compile_context>

<pallas_src>
import jax
import jax.numpy as jnp
from jax.experimental import pallas as pl
from jax.experimental.pallas import tpu as pltpu


# ----------------------------------------------------------------------------
# Batched PointNet + fused LSTM input projection.
# Per grid step (TB items of the flattened B*T axis):
#   h1   = relu(x @ W1' + t1)                # conv1 + bn1 (scale folded in W1')
#   h2   = relu(h1 @ W2' + t2)               # conv2 + bn2
#   feat = max over the N points             # (TB, 128)
#   gx   = feat @ Wih + b_lstm               # LSTM input gates, (TB, 4H)
# ----------------------------------------------------------------------------
def pointnet_gates_kernel(x_ref, w1_ref, t1_ref, w2_ref, t2_ref,
                          wih_ref, b_ref, gx_ref):
    tb = gx_ref.shape[0]
    n = x_ref.shape[0] // tb

    x = x_ref[...]                                             # (TB*N, C) bf16
    h1 = jnp.dot(x, w1_ref[...], preferred_element_type=jnp.float32)
    h1 = jnp.maximum(h1 + t1_ref[...], 0.0)                    # (TB*N, 64) f32
    h2 = jnp.dot(h1.astype(jnp.bfloat16), w2_ref[...],
                 preferred_element_type=jnp.float32)
    h2 = jnp.maximum(h2 + t2_ref[...], 0.0)                    # (TB*N, 128) f32
    feat = jnp.max(h2.reshape(tb, n, -1), axis=1)              # (TB, 128)
    gx_ref[...] = (jnp.dot(feat.astype(jnp.bfloat16), wih_ref[...],
                           preferred_element_type=jnp.float32)
                   + b_ref[...])                               # (TB, 4H)


def _choose_tb(bt, n, target_rows=512):
    """Pick TB (items per grid step).

    Constraints / goals:
      * TB divides B*T, and TB % 8 == 0 or TB == B*T so the (TB, 4H) output
        block stays sublane-aligned.
      * TB*N around `target_rows` keeps the matmul M-dim MXU-sized while the
        f32 intermediates (TB*N x 128) stay a few hundred KiB — well inside
        VMEM on every generation (incl. v7x's 64 MiB per TensorCore).
      * Prefer >= 2 grid steps when possible so a v7x chip can spread the
        "parallel" axis across its two TensorCores.
    """
    candidates = sorted({bt} | {tb for tb in range(8, bt + 1, 8) if bt % tb == 0})
    good = [tb for tb in candidates if tb * n <= target_rows] or [min(candidates)]
    multi = [tb for tb in good if bt // tb >= 2]
    return max(multi if multi else good)


def pointnet_gates(x_rows, bt, n, w1, t1, w2, t2, wih, b):
    rows, c = x_rows.shape
    assert rows == bt * n
    c1, c2, g = w1.shape[1], w2.shape[1], wih.shape[1]
    tb = _choose_tb(bt, n)
    return pl.pallas_call(
        pointnet_gates_kernel,
        out_shape=jax.ShapeDtypeStruct((bt, g), jnp.float32),
        grid=(bt // tb,),
        in_specs=[
            pl.BlockSpec((tb * n, c), lambda i: (i, 0)),
            pl.BlockSpec((c, c1), lambda i: (0, 0)),
            pl.BlockSpec((1, c1), lambda i: (0, 0)),
            pl.BlockSpec((c1, c2), lambda i: (0, 0)),
            pl.BlockSpec((1, c2), lambda i: (0, 0)),
            pl.BlockSpec((c2, g), lambda i: (0, 0)),
            pl.BlockSpec((1, g), lambda i: (0, 0)),
        ],
        out_specs=pl.BlockSpec((tb, g), lambda i: (i, 0)),
        compiler_params=pltpu.CompilerParams(
            dimension_semantics=("parallel",)),
    )(x_rows, w1, t1, w2, t2, wih, b)


# ----------------------------------------------------------------------------
# LSTM recurrence: single grid step, internal fori_loop over T.
# The input projection (x @ Wih + b) is already precomputed/fused upstream, so
# each step only does the tiny h @ Whh matmul plus the gate nonlinearity.
# Padded timesteps (mask == 0) freeze h/c.
# ----------------------------------------------------------------------------
def lstm_kernel(gx_ref, mask_ref, whh_ref, out_ref):
    T, B, G = gx_ref.shape
    H = whh_ref.shape[0]

    # Fused gate nonlinearity: tanh on the g-gate lanes [2H, 3H), sigmoid on
    # the rest, applied once to the full (B, 4H) vreg (hoisted lane mask).
    lane = jax.lax.broadcasted_iota(jnp.int32, (B, G), 1)
    g_zone = jnp.logical_and(lane >= 2 * H, lane < 3 * H)

    def step(t, carry):
        h, c = carry
        gates = gx_ref[t] + jnp.dot(h, whh_ref[...],
                                    preferred_element_type=jnp.float32)
        act = jnp.where(g_zone, jnp.tanh(gates), jax.nn.sigmoid(gates))
        i_g = act[:, 0 * H:1 * H]
        f_g = act[:, 1 * H:2 * H]
        g_g = act[:, 2 * H:3 * H]
        o_g = act[:, 3 * H:4 * H]
        c_new = f_g * c + i_g * g_g
        h_new = o_g * jnp.tanh(c_new)
        m = mask_ref[t]                       # (B, 1): 1.0 while t < lengths[b]
        c = c + m * (c_new - c)
        h = h + m * (h_new - h)
        return (h, c)

    h0 = jnp.zeros((B, H), jnp.float32)
    c0 = jnp.zeros((B, H), jnp.float32)
    h_final, _ = jax.lax.fori_loop(0, T, step, (h0, c0),
                                   unroll=True if T <= 16 else False)
    out_ref[...] = h_final


def lstm_last_hidden(gx_tbg, mask_tb1, whh):
    T, B, G = gx_tbg.shape
    H = whh.shape[0]
    return pl.pallas_call(
        lstm_kernel,
        out_shape=jax.ShapeDtypeStruct((B, H), jnp.float32),
        grid=(1,),
        in_specs=[
            pl.BlockSpec((T, B, G), lambda i: (0, 0, 0)),
            pl.BlockSpec((T, B, 1), lambda i: (0, 0, 0)),
            pl.BlockSpec((H, G), lambda i: (0, 0)),
        ],
        out_specs=pl.BlockSpec((B, H), lambda i: (0, 0)),
        compiler_params=pltpu.CompilerParams(
            dimension_semantics=("arbitrary",)),
    )(gx_tbg, mask_tb1, whh)


# ----------------------------------------------------------------------------
# Full model wrapper (glue in plain JAX)
# ----------------------------------------------------------------------------
def full_model_forward(x_btcn, lengths, params):
    """x_btcn: (B, T, C, N) float32 (PyTorch layout). Returns (B, H)."""
    B, T, C, N = x_btcn.shape
    BT = B * T
    H = params["whh"].shape[0]

    # NCW -> (points, channels) rows.  One small XLA transpose; at large N this
    # could be folded into the kernel instead, but here the copy is negligible.
    x_rows = jnp.transpose(x_btcn.reshape(BT, C, N), (0, 2, 1)).reshape(BT * N, C)

    # bf16 MXU operands (f32 accumulation); elementwise epilogues stay f32.
    gx = pointnet_gates(
        x_rows.astype(jnp.bfloat16), BT, N,
        params["w1"].astype(jnp.bfloat16), params["t1"],
        params["w2"].astype(jnp.bfloat16), params["t2"],
        params["wih"].astype(jnp.bfloat16), params["b_lstm"])     # (BT, 4H)

    # Tiny (T, B, 4H) time-major reorder for the recurrence kernel.
    gx_tbg = jnp.transpose(gx.reshape(B, T, 4 * H), (1, 0, 2))
    mask = (jnp.arange(T)[:, None] < lengths[None, :]).astype(jnp.float32)
    mask = mask.reshape(T, B, 1)
    return lstm_last_hidden(gx_tbg, mask, params["whh"])


# ----------------------------------------------------------------------------
# Deterministic parameter construction (BN eval-mode folding; BN scale folded
# directly into the conv weights so the kernel only does matmul+shift+relu).
# ----------------------------------------------------------------------------
def make_params(key, channel=9, c1=64, c2=128, feat_dim=128, hidden=32):
    ks = jax.random.split(key, 16)
    eps = 1e-5

    def bn_fold(kg, kb, km, kv, conv_b, dim):
        gamma = 1.0 + 0.1 * jax.random.normal(kg, (dim,), jnp.float32)
        beta = 0.1 * jax.random.normal(kb, (dim,), jnp.float32)
        mean = 0.1 * jax.random.normal(km, (dim,), jnp.float32)
        var = 0.5 + jax.random.uniform(kv, (dim,), jnp.float32)
        scale = gamma / jnp.sqrt(var + eps)
        shift = beta + (conv_b - mean) * scale
        return scale.reshape(1, dim), shift.reshape(1, dim)

    W1 = 0.1 * jax.random.normal(ks[0], (c1, channel), jnp.float32)  # (out,in)
    b1 = 0.1 * jax.random.normal(ks[1], (c1,), jnp.float32)
    W2 = 0.1 * jax.random.normal(ks[2], (c2, c1), jnp.float32)
    b2 = 0.1 * jax.random.normal(ks[3], (c2,), jnp.float32)

    s1, t1 = bn_fold(ks[4], ks[5], ks[6], ks[7], b1, c1)
    s2, t2 = bn_fold(ks[8], ks[9], ks[10], ks[11], b2, c2)

    Wih = 0.1 * jax.random.normal(ks[12], (4 * hidden, feat_dim), jnp.float32)
    Whh = 0.1 * jax.random.normal(ks[13], (4 * hidden, hidden), jnp.float32)
    b_ih = 0.1 * jax.random.normal(ks[14], (4 * hidden,), jnp.float32)
    b_hh = 0.1 * jax.random.normal(ks[15], (4 * hidden,), jnp.float32)

    return {
        "w1": W1.T * s1, "t1": t1,              # (C, 64) scale-folded, (1, 64)
        "w2": W2.T * s2, "t2": t2,              # (64, 128), (1, 128)
        "wih": Wih.T,                           # (128, 4H)
        "whh": Whh.T,                           # (H, 4H)
        "b_lstm": (b_ih + b_hh).reshape(1, 4 * hidden),
    }


# ----------------------------------------------------------------------------
# Pure-JAX reference for correctness checking
# ----------------------------------------------------------------------------
def reference_forward(x_btcn, lengths, params, hidden=32):
    B, T, C, N = x_btcn.shape
    x_bnc = jnp.transpose(x_btcn.reshape(B * T, C, N), (0, 2, 1))
    h1 = jnp.maximum(
        jnp.einsum("bnc,ck->bnk", x_bnc, params["w1"]) + params["t1"], 0.0)
    h2 = jnp.maximum(
        jnp.einsum("bnk,km->bnm", h1, params["w2"]) + params["t2"], 0.0)
    feat = jnp.max(h2, axis=1)                           # (B*T, 128)
    gates_x = (feat @ params["wih"] + params["b_lstm"]).reshape(B, T, -1)

    H = hidden
    h = jnp.zeros((B, H), jnp.float32)
    c = jnp.zeros((B, H), jnp.float32)
    for t in range(T):
        gates = gates_x[:, t, :] + h @ params["whh"]
        i_g = jax.nn.sigmoid(gates[:, 0 * H:1 * H])
        f_g = jax.nn.sigmoid(gates[:, 1 * H:2 * H])
        g_g = jnp.tanh(gates[:, 2 * H:3 * H])
        o_g = jax.nn.sigmoid(gates[:, 3 * H:4 * H])
        c_new = f_g * c + i_g * g_g
        h_new = o_g * jnp.tanh(c_new)
        valid = (t < lengths)[:, None]
        c = jnp.where(valid, c_new, c)
        h = jnp.where(valid, h_new, h)
    return h


if __name__ == "__main__":
    B, T, C, N = 2, 4, 9, 16
    HIDDEN = 32

    key = jax.random.PRNGKey(0)
    k_x, k_p = jax.random.split(key)
    x = jax.random.normal(k_x, (B, T, C, N), jnp.float32)
    lengths = jnp.array([4, 3], dtype=jnp.int32)
    params = make_params(k_p, channel=C, hidden=HIDDEN)

    out = full_model_forward(x, lengths, params)
    out = jax.block_until_ready(out)

    ref = reference_forward(x, lengths, params, hidden=HIDDEN)
    assert out.shape == (B, HIDDEN), out.shape
    assert jnp.allclose(out, ref, rtol=2e-2, atol=2e-2), (
        float(jnp.max(jnp.abs(out - ref))))

    print("KERNEL_OK")
</pallas_src>

<mosaic_0001>
module attributes {stable_mosaic.version = 11 : i64} {
  func.func @pointnet_gates_kernel(%arg0: i32, %arg1: memref<128x9xbf16, #tpu.memory_space<vmem>>, %arg2: memref<9x64xbf16, #tpu.memory_space<vmem>>, %arg3: memref<1x64xf32, #tpu.memory_space<vmem>>, %arg4: memref<64x128xbf16, #tpu.memory_space<vmem>>, %arg5: memref<1x128xf32, #tpu.memory_space<vmem>>, %arg6: memref<128x128xbf16, #tpu.memory_space<vmem>>, %arg7: memref<1x128xf32, #tpu.memory_space<vmem>>, %arg8: memref<8x128xf32, #tpu.memory_space<vmem>>) attributes {dimension_semantics = [#tpu.dimension_semantics<parallel>], iteration_bounds = array<i64: 1>, scalar_prefetch = 0 : i64, scratch_operands = 0 : i64, tpu.core_type = #tpu.core_type<tc>, window_params = [{transform_indices = @transform_0, window_bounds = array<i64: 128, 9>}, {pipeline_mode = #tpu.pipeline_mode<synchronous>, transform_indices = @transform_1, window_bounds = array<i64: 9, 64>}, {pipeline_mode = #tpu.pipeline_mode<synchronous>, transform_indices = @transform_2, window_bounds = array<i64: 1, 64>}, {pipeline_mode = #tpu.pipeline_mode<synchronous>, transform_indices = @transform_3, window_bounds = array<i64: 64, 128>}, {pipeline_mode = #tpu.pipeline_mode<synchronous>, transform_indices = @transform_4, window_bounds = array<i64: 1, 128>}, {pipeline_mode = #tpu.pipeline_mode<synchronous>, transform_indices = @transform_5, window_bounds = array<i64: 128, 128>}, {pipeline_mode = #tpu.pipeline_mode<synchronous>, transform_indices = @transform_6, window_bounds = array<i64: 1, 128>}, {transform_indices = @transform_7, window_bounds = array<i64: 8, 128>}]} {
    %c0 = arith.constant 0 : index
    %c0_0 = arith.constant 0 : index
    %0 = vector.load %arg1[%c0, %c0_0] : memref<128x9xbf16, #tpu.memory_space<vmem>>, vector<128x9xbf16>
    %c0_1 = arith.constant 0 : index
    %c0_2 = arith.constant 0 : index
    %1 = vector.load %arg2[%c0_1, %c0_2] : memref<9x64xbf16, #tpu.memory_space<vmem>>, vector<9x64xbf16>
    %cst = arith.constant dense<0.000000e+00> : vector<128x64xf32>
    %2 = tpu.matmul %0, %1, %cst {dimension_numbers = #tpu.dot_dimension_numbers<[1], [0], [0], [1], [0, 0, 1, 1], [], []>} : vector<128x9xbf16>, vector<9x64xbf16>, vector<128x64xf32> -> vector<128x64xf32>
    %c0_3 = arith.constant 0 : index
    %c0_4 = arith.constant 0 : index
    %3 = vector.load %arg3[%c0_3, %c0_4] : memref<1x64xf32, #tpu.memory_space<vmem>>, vector<1x64xf32>
    %4 = vector.broadcast %3 : vector<1x64xf32> to vector<128x64xf32>
    %5 = arith.addf %2, %4 : vector<128x64xf32>
    %cst_5 = arith.constant 0.000000e+00 : f32
    %6 = vector.broadcast %cst_5 : f32 to vector<128x64xf32>
    %7 = arith.maximumf %5, %6 : vector<128x64xf32>
    %8 = arith.truncf %7 : vector<128x64xf32> to vector<128x64xbf16>
    %c0_6 = arith.constant 0 : index
    %c0_7 = arith.constant 0 : index
    %9 = vector.load %arg4[%c0_6, %c0_7] : memref<64x128xbf16, #tpu.memory_space<vmem>>, vector<64x128xbf16>
    %cst_8 = arith.constant dense<0.000000e+00> : vector<128x128xf32>
    %10 = tpu.matmul %8, %9, %cst_8 {dimension_numbers = #tpu.dot_dimension_numbers<[1], [0], [0], [1], [0, 0, 1, 1], [], []>} : vector<128x64xbf16>, vector<64x128xbf16>, vector<128x128xf32> -> vector<128x128xf32>
    %c0_9 = arith.constant 0 : index
    %c0_10 = arith.constant 0 : index
    %11 = vector.load %arg5[%c0_9, %c0_10] : memref<1x128xf32, #tpu.memory_space<vmem>>, vector<1x128xf32>
    %12 = vector.broadcast %11 : vector<1x128xf32> to vector<128x128xf32>
    %13 = arith.addf %10, %12 : vector<128x128xf32>
    %cst_11 = arith.constant 0.000000e+00 : f32
    %14 = vector.broadcast %cst_11 : f32 to vector<128x128xf32>
    %15 = arith.maximumf %13, %14 : vector<128x128xf32>
    %16 = vector.shape_cast %15 : vector<128x128xf32> to vector<8x16x128xf32>
    %cst_12 = arith.constant dense<0xFF800000> : vector<8x128xf32>
    %17 = vector.multi_reduction <maximumf>, %16, %cst_12 [1] : vector<8x16x128xf32> to vector<8x128xf32>
    %18 = arith.truncf %17 : vector<8x128xf32> to vector<8x128xbf16>
    %c0_13 = arith.constant 0 : index
    %c0_14 = arith.constant 0 : index
    %19 = vector.load %arg6[%c0_13, %c0_14] : memref<128x128xbf16, #tpu.memory_space<vmem>>, vector<128x128xbf16>
    %cst_15 = arith.constant dense<0.000000e+00> : vector<8x128xf32>
    %20 = tpu.matmul %18, %19, %cst_15 {dimension_numbers = #tpu.dot_dimension_numbers<[1], [0], [0], [1], [0, 0, 1, 1], [], []>} : vector<8x128xbf16>, vector<128x128xbf16>, vector<8x128xf32> -> vector<8x128xf32>
    %c0_16 = arith.constant 0 : index
    %c0_17 = arith.constant 0 : index
    %21 = vector.load %arg7[%c0_16, %c0_17] : memref<1x128xf32, #tpu.memory_space<vmem>>, vector<1x128xf32>
    %22 = vector.broadcast %21 : vector<1x128xf32> to vector<8x128xf32>
    %23 = arith.addf %20, %22 : vector<8x128xf32>
    %c0_18 = arith.constant 0 : index
    %c0_19 = arith.constant 0 : index
    %24 = vector.load %arg8[%c0_18, %c0_19] : memref<8x128xf32, #tpu.memory_space<vmem>>, vector<8x128xf32>
    tpu.vector_store %arg8[%c0_18, %c0_19], %23 {strides = array<i32>} : memref<8x128xf32, #tpu.memory_space<vmem>>, vector<8x128xf32>,
    return
  }
  func.func @transform_0(%arg0: i32) -> (i32, i32) {
    %c0_i32 = arith.constant 0 : i32
    %c0_i32_0 = arith.constant 0 : i32
    return %arg0, %c0_i32 : i32, i32
  }
  func.func @transform_1(%arg0: i32) -> (i32, i32) {
    %c0_i32 = arith.constant 0 : i32
    %c0_i32_0 = arith.constant 0 : i32
    %c0_i32_1 = arith.constant 0 : i32
    return %c0_i32, %c0_i32_0 : i32, i32
  }
  func.func @transform_2(%arg0: i32) -> (i32, i32) {
    %c0_i32 = arith.constant 0 : i32
    %c0_i32_0 = arith.constant 0 : i32
    %c0_i32_1 = arith.constant 0 : i32
    return %c0_i32, %c0_i32_0 : i32, i32
  }
  func.func @transform_3(%arg0: i32) -> (i32, i32) {
    %c0_i32 = arith.constant 0 : i32
    %c0_i32_0 = arith.constant 0 : i32
    %c0_i32_1 = arith.constant 0 : i32
    return %c0_i32, %c0_i32_0 : i32, i32
  }
  func.func @transform_4(%arg0: i32) -> (i32, i32) {
    %c0_i32 = arith.constant 0 : i32
    %c0_i32_0 = arith.constant 0 : i32
    %c0_i32_1 = arith.constant 0 : i32
    return %c0_i32, %c0_i32_0 : i32, i32
  }
  func.func @transform_5(%arg0: i32) -> (i32, i32) {
    %c0_i32 = arith.constant 0 : i32
    %c0_i32_0 = arith.constant 0 : i32
    %c0_i32_1 = arith.constant 0 : i32
    return %c0_i32, %c0_i32_0 : i32, i32
  }
  func.func @transform_6(%arg0: i32) -> (i32, i32) {
    %c0_i32 = arith.constant 0 : i32
    %c0_i32_0 = arith.constant 0 : i32
    %c0_i32_1 = arith.constant 0 : i32
    return %c0_i32, %c0_i32_0 : i32, i32
  }
  func.func @transform_7(%arg0: i32) -> (i32, i32) {
    %c0_i32 = arith.constant 0 : i32
    %c0_i32_0 = arith.constant 0 : i32
    return %arg0, %c0_i32 : i32, i32
  }
}

</mosaic_0001>

<bundles_post_ra>
// kernel: tpu_custom_call.1
= control target key start
LH: loop header
LB: loop body
LE: loop exit
PB: predicated region body
PF: predicated region fallthrough
CT: control target
= control target key end

     0   :  { %12 = vsyncpa [#allocation3], 0  ;;  %s1016_s0 = inlined_call_operand.vmem [shape: bf16[128,9], index: 0, kind: input, shape index: {}]   ;;  %s1017_s1 = inlined_call_operand.vmem [shape: bf16[9,64], index: 1, kind: input, shape index: {}]   ;;  %s1018_s2 = inlined_call_operand.vmem [shape: f32[1,64], index: 2, kind: input, shape index: {}]   ;;  %s1019_s3 = inlined_call_operand.hbm [shape: bf16[64,128], index: 3, kind: input, shape index: {}]   ;;  %s1020_s4 = inlined_call_operand.vmem [shape: f32[1,128], index: 4, kind: input, shape index: {}]   ;;  %s1021_s5 = inlined_call_operand.vmem [shape: bf16[128,128], index: 5, kind: input, shape index: {}]   ;;  %s1022_s6 = inlined_call_operand.vmem [shape: f32[1,128], index: 6, kind: input, shape index: {}]   ;;  %s1023_s7 = inlined_call_operand.hbm [shape: f32[8,128], index: 7, kind: output, shape index: {}]  }
   0x1   :  { %13 = vsyncpa [#allocation4], 0  ;;  %s869_s24 = smov [#allocation2]  }
   0x2   :  { %s25_s25 = sshll.u32 %s869_s24, 4  ;;  %s26_s25 = int_to_ptr.vmem [resolvable:$true] %s25_s25 }
   0x3   :  { %s833_s26 = scalar_lea.vmem %s26_s25, 512  ;;  %p838_p1 = scmp.lt.s32.totalorder %s26_s25, %s26_s25 }
   0x4   :  { %p834_p0 = scmp.ne.s32.totalorder %s26_s25, %s833_s26  ;;  %p839_p2 = scmp.lt.s32.totalorder %s833_s26, %s833_s26 }
   0x6   :  { %p840_p3 = por %p839_p2, %p838_p1 }
   0x8   :  { %p841_p4 = pnand %p840_p3, %p834_p0 }
   0xa   :  { %844 = shalt.err (!%p841_p4)
}
   0xb   :  { %s870_s27 = smov 64   ;;  %s871_s28 = smov 4  }
   0xc   :  { %31 = dma.hbm_to_vmem [thread:$0]  %s1019_s3, 512, %s26_s25, [#allocation3], %s870_s27, %s870_s27, %s871_s28  }
   0xd   :  { %865 = dma.done.wait [#allocation3], 512  }
   0xe   :  { %866 = vsyncadd [#allocation3], 4294966784  ;;  %vm137_vm0 = vcmask 1043456   ;;  %vm138_vm1 = vcmask 1044480   ;;  %v872_v0 = vmov 65535   ;;  %vm112_vm2 = vcmask 72704  }
   0xf   :  { %v139_v1 = vsel %vm137_vm0, 4294967295, %v872_v0  ;;  %v804_v3 = vld [vmem:[%s1017_s1] sm:$0x1f]   ;;  %v806_v6 = vld [vmem:[%s1016_s0 + $0x8] sm:$0xff]   ;;  %v807_v7 = vld [vmem:[%s1016_s0 + $0x10] sm:$0xff]   ;;  %vm304_vm3 = vcmask 523264  }
  0x10   :  { %v140_v2 = vsel %vm138_vm1, %v139_v1, 0  ;;  %v805_v4 = vld [vmem:[%s1016_s0] sm:$0xff]   ;;  %v813_v8 = vld [vmem:[#allocation2 + $0x18] sm:$0xff]   ;;  %v810_v11 = vld [vmem:[%s1016_s0 + $0x28] sm:$0xff]   ;;  %vm874_vm4 = vmmov 0   ;;  %vm545_vm5 = vcmask 1041409  }
  0x11   :  { %v142_v5 = vand.u32 %v804_v3, %v140_v2  ;;  %737 = vmatprep.mubr.msk.bf16.mxu0 %vm112_vm2, %v805_v4  ;;  %v808_v9 = vld [vmem:[%s1016_s0 + $0x18] sm:$0xff]   ;;  %v809_v10 = vld [vmem:[%s1016_s0 + $0x20] sm:$0xff]   ;;  %753 = vmatprep.subr.bf16.mxu1 %v813_v8  ;;  %v811_v12 = vld [vmem:[%s1016_s0 + $0x30] sm:$0xff]   ;;  %vm547_vm6 = vcmask 1042434   ;;  %vm549_vm7 = vcmask 1043459   ;;  %vm551_vm8 = vcmask 1044484  }
  0x12   :  { %754 = vmatpush3.bf16.msra.mxu1 %v813_v8  ;;  %v812_v13 = vld [vmem:[%s1016_s0 + $0x38] sm:$0xff]   ;;  %v814_v14 = vld [vmem:[#allocation2 + $0x10] sm:$0xff]   ;;  %v815_v15 = vld [vmem:[#allocation2 + $0x8] sm:$0xff]   ;;  %vm553_vm9 = vcmask 1045509   ;;  %vm555_vm10 = vcmask 1046534   ;;  %vm557_vm11 = vcmask 1047559  }
  0x13   :  { %735 = vmatprep.subr.bf16.mxu0 %v142_v5  ;;  %755 = vmatprep.subr.bf16.mxu1 %v814_v14  ;;  %v816_v16 = vld [vmem:[#allocation2] sm:$0xff]   ;;  %s875_s17 = smov [#allocation5]  }
  0x14   :  { %736 = vmatpush3.bf16.msra.mxu0 %v142_v5  ;;  %v665_v19 = vld [vmem:[%s1018_s2] ss:$0 sm:$0xff]  ;;  %s656_s18 = sshll.u32 %s875_s17, 4  ;;  %s657_s18 = int_to_ptr.vmem [resolvable:$true] %s656_s18 }
  0x15   :  { %s845_s19 = scalar_lea.vmem %s657_s18, 128  ;;  %p850_p6 = scmp.lt.s32.totalorder %s657_s18, %s657_s18 }
  0x16   :  { %756 = vmatpush3.bf16.msra.mxu1 %v814_v14  ;;  %v820_v14 = vld [vmem:[%s1021_s5 + $0x20] sm:$0xff]   ;;  %p846_p5 = scmp.ne.s32.totalorder %s657_s18, %s845_s19  ;;  %p851_p7 = scmp.lt.s32.totalorder %s845_s19, %s845_s19 }
  0x17   :  { %738 = vmatmul.mubr.msk.bf16.vlgmr.msra.gmra.mxu0 %vm112_vm2, %v806_v6  ;;  %757 = vmatprep.subr.bf16.mxu1 %v815_v15 }
  0x18   :  { %741 = vmatprep.mubr.msk.bf16.mxu0 %vm112_vm2, %v807_v7  ;;  %p852_p8 = por %p851_p7, %p850_p6 }
  0x1a   :  { %758 = vmatpush3.bf16.msra.mxu1 %v815_v15  ;;  %v821_v15 = vld [vmem:[%s1021_s5 + $0x18] sm:$0xff]   ;;  %p853_p9 = pnand %p852_p8, %p846_p5 }
  0x1b   :  { %759 = vmatprep.subr.bf16.mxu1 %v816_v16 }
  0x1e   :  { %760 = vmatpush3.bf16.msra.mxu1 %v816_v16  ;;  %v822_v16 = vld [vmem:[%s1021_s5 + $0x10] sm:$0xff]  }
  0x1f   :  { %742 = vmatmul.mubr.msk.bf16.gmra.mxu0 %vm112_vm2, %v808_v9 }
  0x20   :  { %745 = vmatprep.mubr.msk.bf16.mxu0 %vm112_vm2, %v809_v10  ;;  %v817_v10 = vld [vmem:[%s1021_s5 + $0x38] sm:$0xff]  }
  0x27   :  { %746 = vmatmul.mubr.msk.bf16.gmra.mxu0 %vm112_vm2, %v810_v11  ;;  %v873_v11 = vmov 0.0  }
  0x28   :  { %749 = vmatprep.mubr.msk.bf16.mxu0 %vm112_vm2, %v811_v12  ;;  %777 = vmatprep.subr.bf16.mxu0 %v873_v11  ;;  %v818_v12 = vld [vmem:[%s1021_s5 + $0x30] sm:$0xff]  }
  0x29   :  { %778 = vmatpush3.bf16.msra.mxu0 %v817_v10 }
  0x2a   :  { %779 = vmatprep.subr.bf16.mxu0 %v873_v11 }
  0x2d   :  { %780 = vmatpush3.bf16.msra.mxu0 %v818_v12 }
  0x2e   :  { %781 = vmatprep.subr.bf16.mxu0 %v873_v11 }
  0x2f   :  { %750 = vmatmul.mubr.msk.bf16.gmra.mxu0 %vm112_vm2, %v812_v13  ;;  %v819_v13 = vld [vmem:[%s1021_s5 + $0x28] sm:$0xff]  }
  0x30   :  { %793 = vmatprep.mubr.msk.bf16.mxu0 %vm874_vm4, %v873_v11 }
  0x31   :  { %782 = vmatpush3.bf16.msra.mxu0 %v819_v13 }
  0x32   :  { %783 = vmatprep.subr.bf16.mxu0 %v873_v11 }
  0x35   :  { %784 = vmatpush3.bf16.msra.mxu0 %v820_v14 }
  0x36   :  { %785 = vmatprep.subr.bf16.mxu0 %v873_v11 }
  0x39   :  { %786 = vmatpush3.bf16.msra.mxu0 %v821_v15 }
  0x3a   :  { %787 = vmatprep.subr.bf16.mxu0 %v873_v11 }
  0x3d   :  { %788 = vmatpush3.bf16.msra.mxu0 %v822_v16 }
  0x3e   :  { %789 = vmatprep.subr.bf16.mxu0 %v873_v11 }
  0xd7   :  { %v739_v17 = vpop.f32.mrf.mxu0 }
  0xd8   :  { %v187_v23 = vadd.f32 %v739_v17, %v665_v19  ;;  %v823_v17 = vld [vmem:[%s1021_s5 + $0x8] sm:$0xff]  }
  0xd9   :  { %v178_v18 = vpop.f32.mrf.mxu0  ;;  %790 = vmatpush3.bf16.msra.mxu0 %v823_v17 }
  0xda   :  { %v179_v21 = vadd.f32 %v665_v19, %v178_v18  ;;  %v243_v30 = vmax.f32 %v187_v23, 0.0  ;;  %v824_v18 = vld [vmem:[%s1021_s5] sm:$0xff]   ;;  %791 = vmatprep.subr.bf16.mxu0 %v873_v11 }
  0xdb   :  { %v740_v20 = vpop.f32.mrf.mxu0 }
  0xdc   :  { %v190_v22 = vadd.f32 %v740_v20, %v665_v19  ;;  %v241_v28 = vmax.f32 %v179_v21, 0.0  ;;  %v992_v20 = vld [vmem:[%s1020_s4] ss:$0 sm:$0xff] }
  0xdd   :  { %v181_v24 = vpop.f32.mrf.mxu0  ;;  %792 = vmatpush3.bf16.msra.mxu0 %v824_v18 }
  0xde   :  { %v182_v25 = vadd.f32 %v665_v19, %v181_v24  ;;  %v244_v26 = vmax.f32 %v190_v22, 0.0 }
  0xdf   :  { %v743_v27 = vpop.f32.mrf.mxu0 }
  0xe0   :  { %v242_v29 = vmax.f32 %v182_v25, 0.0  ;;  %v258_v33 = vpack.c.bf16 %v244_v26, %v243_v30  ;;  %v203_v37 = vadd.f32 %v743_v27, %v665_v19 }
  0xe1   :  { %v194_v31 = vpop.f32.mrf.mxu0 }
  0xe2   :  { %v257_v32 = vpack.c.bf16 %v242_v29, %v241_v28  ;;  %v195_v35 = vadd.f32 %v665_v19, %v194_v31  ;;  %v247_v44 = vmax.f32 %v203_v37, 0.0 }
  0xe3   :  { %v744_v34 = vpop.f32.mrf.mxu0 }
  0xe4   :  { %v206_v36 = vadd.f32 %v744_v34, %v665_v19  ;;  %761 = vmatprep.mubr.msk.bf16.mxu1 %vm304_vm3, %v257_v32  ;;  %v245_v42 = vmax.f32 %v195_v35, 0.0 }
  0xe5   :  { %v197_v38 = vpop.f32.mrf.mxu0  ;;  %762 = vmatmul.mubr.msk.bf16.vlgmr.msra.gmra.mxu1 %vm304_vm3, %v258_v33 }
  0xe6   :  { %v198_v39 = vadd.f32 %v665_v19, %v197_v38  ;;  %v248_v40 = vmax.f32 %v206_v36, 0.0 }
  0xe7   :  { %v747_v41 = vpop.f32.mrf.mxu0 }
  0xe8   :  { %v246_v43 = vmax.f32 %v198_v39, 0.0  ;;  %v260_v47 = vpack.c.bf16 %v248_v40, %v247_v44  ;;  %v219_v51 = vadd.f32 %v747_v41, %v665_v19 }
  0xe9   :  { %v210_v45 = vpop.f32.mrf.mxu0 }
  0xea   :  { %v259_v46 = vpack.c.bf16 %v246_v43, %v245_v42  ;;  %v211_v49 = vadd.f32 %v665_v19, %v210_v45  ;;  %v251_v58 = vmax.f32 %v219_v51, 0.0 }
  0xeb   :  { %v748_v48 = vpop.f32.mrf.mxu0 }
  0xec   :  { %v222_v50 = vadd.f32 %v748_v48, %v665_v19  ;;  %765 = vmatprep.mubr.msk.bf16.mxu1 %vm304_vm3, %v259_v46  ;;  %v249_v56 = vmax.f32 %v211_v49, 0.0 }
  0xed   :  { %v213_v52 = vpop.f32.mrf.mxu0  ;;  %766 = vmatmul.mubr.msk.bf16.gmra.mxu1 %vm304_vm3, %v260_v47 }
  0xee   :  { %v214_v53 = vadd.f32 %v665_v19, %v213_v52  ;;  %v252_v54 = vmax.f32 %v222_v50, 0.0 }
  0xef   :  { %v751_v55 = vpop.f32.mrf.mxu0 }
  0xf0   :  { %v250_v57 = vmax.f32 %v214_v53, 0.0  ;;  %v262_v61 = vpack.c.bf16 %v252_v54, %v251_v58  ;;  %v235_v1 = vadd.f32 %v751_v55, %v665_v19 }
  0xf1   :  { %v226_v59 = vpop.f32.mrf.mxu0 }
  0xf2   :  { %v261_v60 = vpack.c.bf16 %v250_v57, %v249_v56  ;;  %v227_v63 = vadd.f32 %v665_v19, %v226_v59  ;;  %v255_v7 = vmax.f32 %v235_v1, 0.0 }
  0xf3   :  { %v752_v62 = vpop.f32.mrf.mxu0 }
  0xf4   :  { %v238_v0 = vadd.f32 %v752_v62, %v665_v19  ;;  %769 = vmatprep.mubr.msk.bf16.mxu1 %vm304_vm3, %v261_v60  ;;  %v253_v5 = vmax.f32 %v227_v63, 0.0 }
  0xf5   :  { %v229_v2 = vpop.f32.mrf.mxu0  ;;  %770 = vmatmul.mubr.msk.bf16.gmra.mxu1 %vm304_vm3, %v262_v61 }
  0xf6   :  { %v230_v3 = vadd.f32 %v665_v19, %v229_v2  ;;  %v256_v4 = vmax.f32 %v238_v0, 0.0 }
  0xf8   :  { %v254_v6 = vmax.f32 %v230_v3, 0.0  ;;  %v264_v9 = vpack.c.bf16 %v256_v4, %v255_v7 }
  0xfa   :  { %v263_v8 = vpack.c.bf16 %v254_v6, %v253_v5 }
  0xfc   :  { %773 = vmatprep.mubr.msk.bf16.mxu1 %vm304_vm3, %v263_v8 }
  0xfd   :  { %774 = vmatmul.mubr.msk.bf16.gmra.mxu1 %vm304_vm3, %v264_v9 }
 0x1a5   :  { %v763_v19 = vpop.f32.mrf.mxu1 }
 0x1a6   :  { %v372_v22 = vadd.f32 %v763_v19, %v992_v20 }
 0x1a7   :  { %v363_v21 = vpop.f32.mrf.mxu1 }
 0x1a8   :  { %v364_v24 = vadd.f32 %v992_v20, %v363_v21  ;;  %v428_v27 = vmax.f32 %v372_v22, 0.0 }
 0x1a9   :  { %v764_v23 = vpop.f32.mrf.mxu1 }
 0x1aa   :  { %v375_v25 = vadd.f32 %v764_v23, %v992_v20  ;;  %v426_v31 = vmax.f32 %v364_v24, 0.0 }
 0x1ab   :  { %v366_v26 = vpop.f32.mrf.mxu1 }
 0x1ac   :  { %v429_v28 = vmax.f32 %v375_v25, 0.0  ;;  %v367_v29 = vadd.f32 %v992_v20, %v366_v26 }
 0x1ad   :  { %v767_v30 = vpop.f32.mrf.mxu1 }
 0x1ae   :  { %v449_v32 = vmax.f32 %v428_v27, %v429_v28  ;;  %v427_v33 = vmax.f32 %v367_v29, 0.0  ;;  %v388_v36 = vadd.f32 %v767_v30, %v992_v20 }
 0x1af   :  { %v379_v34 = vpop.f32.mrf.mxu1 }
 0x1b0   :  { %v442_v35 = vmax.f32 %v426_v31, %v427_v33  ;;  %v450_v38 = vrot.slane %v449_v32, 4  ;;  %v380_v40 = vadd.f32 %v992_v20, %v379_v34  ;;  %v432_v44 = vmax.f32 %v388_v36, 0.0 }
 0x1b1   :  { %v768_v37 = vpop.f32.mrf.mxu1 }
 0x1b2   :  { %v443_v39 = vrot.slane %v442_v35, 4  ;;  %v391_v41 = vadd.f32 %v768_v37, %v992_v20  ;;  %v451_v48 = vmax.f32 %v449_v32, %v450_v38  ;;  %v430_v49 = vmax.f32 %v380_v40, 0.0 }
 0x1b3   :  { %v382_v42 = vpop.f32.mrf.mxu1 }
 0x1b4   :  { %v444_v43 = vmax.f32 %v442_v35, %v443_v39  ;;  %v433_v45 = vmax.f32 %v391_v41, 0.0  ;;  %v383_v46 = vadd.f32 %v992_v20, %v382_v42  ;;  %v452_v58 = vrot.slane %v451_v48, 2 }
 0x1b5   :  { %v771_v47 = vpop.f32.mrf.mxu1 }
 0x1b6   :  { %v463_v50 = vmax.f32 %v432_v44, %v433_v45  ;;  %v431_v51 = vmax.f32 %v383_v46, 0.0  ;;  %v445_v53 = vrot.slane %v444_v43, 2  ;;  %v404_v56 = vadd.f32 %v771_v47, %v992_v20 }
 0x1b7   :  { %v395_v52 = vpop.f32.mrf.mxu1  ;;  %v453_v6 = vmax.f32 %v451_v48, %v452_v58 }
 0x1b8   :  { %v464_v54 = vrot.slane %v463_v50, 4  ;;  %v456_v55 = vmax.f32 %v430_v49, %v431_v51  ;;  %v396_v61 = vadd.f32 %v992_v20, %v395_v52  ;;  %v446_v0 = vmax.f32 %v444_v43, %v445_v53 }
 0x1b9   :  { %v772_v57 = vpop.f32.mrf.mxu1  ;;  %v436_v2 = vmax.f32 %v404_v56, 0.0  ;;  %v454_v19 = vrot.slane %v453_v6, 1 }
 0x1ba   :  { %v457_v59 = vrot.slane %v456_v55, 4  ;;  %v465_v60 = vmax.f32 %v463_v50, %v464_v54  ;;  %v407_v62 = vadd.f32 %v772_v57, %v992_v20  ;;  %v434_v9 = vmax.f32 %v396_v61, 0.0 }
 0x1bb   :  { %v398_v63 = vpop.f32.mrf.mxu1  ;;  %v447_v13 = vrot.slane %v446_v0, 1  ;;  %v455_v34 = vmax.f32 %v453_v6, %v454_v19 }
 0x1bc   :  { %v458_v1 = vmax.f32 %v456_v55, %v457_v59  ;;  %v437_v3 = vmax.f32 %v407_v62, 0.0  ;;  %v399_v4 = vadd.f32 %v992_v20, %v398_v63  ;;  %v466_v8 = vrot.slane %v465_v60, 2 }
 0x1bd   :  { %v775_v5 = vpop.f32.mrf.mxu1  ;;  %v448_v28 = vmax.f32 %v446_v0, %v447_v13  ;;  %v499_v46 = vpack.c.bf16 %v455_v34, %v455_v34 }
 0x1be   :  { %v459_v7 = vrot.slane %v458_v1, 2  ;;  %v477_v10 = vmax.f32 %v436_v2, %v437_v3  ;;  %v435_v11 = vmax.f32 %v399_v4, 0.0  ;;  %v420_v17 = vadd.f32 %v775_v5, %v992_v20 }
 0x1bf   :  { %v411_v12 = vpop.f32.mrf.mxu1  ;;  %v467_v23 = vmax.f32 %v465_v60, %v466_v8  ;;  %v498_v43 = vpack.c.bf16 %v448_v28, %v448_v28  ;;  %v538_v56 = vunpack.c.l.b16 %v499_v46 }
 0x1c0   :  { %v460_v14 = vmax.f32 %v458_v1, %v459_v7  ;;  %v478_v15 = vrot.slane %v477_v10, 4  ;;  %v470_v16 = vmax.f32 %v434_v9, %v435_v11  ;;  %v412_v22 = vadd.f32 %v992_v20, %v411_v12 }
 0x1c1   :  { %v776_v18 = vpop.f32.mrf.mxu1  ;;  %v440_v32 = vmax.f32 %v420_v17, 0.0  ;;  %v468_v38 = vrot.slane %v467_v23, 1  ;;  %v537_v53 = vunpack.c.l.b16 %v498_v43 }
 0x1c2   :  { %v461_v21 = vrot.slane %v460_v14, 1  ;;  %v479_v24 = vmax.f32 %v477_v10, %v478_v15  ;;  %v471_v25 = vrot.slane %v470_v16, 4  ;;  %v423_v26 = vadd.f32 %v776_v18, %v992_v20 }
 0x1c3   :  { %v414_v27 = vpop.f32.mrf.mxu1  ;;  %v438_v36 = vmax.f32 %v412_v22, 0.0  ;;  %v546_v0 = vsel %vm545_vm5, %v538_v56, %v537_v53 }
 0x1c4   :  { %v415_v29 = vadd.f32 %v992_v20, %v414_v27  ;;  %v480_v30 = vrot.slane %v479_v24, 2  ;;  %v472_v31 = vmax.f32 %v470_v16, %v471_v25  ;;  %v441_v33 = vmax.f32 %v423_v26, 0.0 }
 0x1c5   :  { %v462_v35 = vmax.f32 %v460_v14, %v461_v21  ;;  %v469_v20 = vmax.f32 %v467_v23, %v468_v38  ;;  %v696_v21 = vld [vmem:[%s1022_s6] ss:$0 sm:$0xff] }
 0x1c6   :  { %v439_v37 = vmax.f32 %v415_v29, 0.0  ;;  %v481_v39 = vmax.f32 %v479_v24, %v480_v30  ;;  %v473_v40 = vrot.slane %v472_v31, 2  ;;  %v491_v41 = vmax.f32 %v440_v32, %v441_v33 }
 0x1c7   :  { %v500_v47 = vpack.c.bf16 %v462_v35, %v462_v35  ;;  %v501_v59 = vpack.c.bf16 %v469_v20, %v469_v20 }
 0x1c8   :  { %v484_v42 = vmax.f32 %v438_v36, %v439_v37  ;;  %v474_v44 = vmax.f32 %v472_v31, %v473_v40  ;;  %v492_v45 = vrot.slane %v491_v41, 4  ;;  %v482_v49 = vrot.slane %v481_v39, 1 }
 0x1c9   :  { %v539_v57 = vunpack.c.l.b16 %v500_v47  ;;  %v540_v5 = vunpack.c.l.b16 %v501_v59 }
 0x1ca   :  { %v485_v48 = vrot.slane %v484_v42, 4  ;;  %v475_v50 = vrot.slane %v474_v44, 1  ;;  %v493_v51 = vmax.f32 %v491_v41, %v492_v45  ;;  %v483_v60 = vmax.f32 %v481_v39, %v482_v49 }
 0x1cb   :  { %v548_v2 = vsel %vm547_vm6, %v539_v57, %v546_v0 }
 0x1cc   :  { %v486_v52 = vmax.f32 %v484_v42, %v485_v48  ;;  %v476_v54 = vmax.f32 %v474_v44, %v475_v50  ;;  %v494_v55 = vrot.slane %v493_v51, 2  ;;  %v503_v6 = vpack.c.bf16 %v483_v60, %v483_v60 }
 0x1cd   :  { %v550_v9 = vsel %vm549_vm7, %v540_v5, %v548_v2 }
 0x1ce   :  { %v487_v58 = vrot.slane %v486_v52, 2  ;;  %v502_v61 = vpack.c.bf16 %v476_v54, %v476_v54  ;;  %v495_v62 = vmax.f32 %v493_v51, %v494_v55  ;;  %v542_v13 = vunpack.c.l.b16 %v503_v6 }
 0x1d0   :  { %v488_v63 = vmax.f32 %v486_v52, %v487_v58  ;;  %v496_v1 = vrot.slane %v495_v62, 1  ;;  %v541_v3 = vunpack.c.l.b16 %v502_v61 }
 0x1d2   :  { %v489_v4 = vrot.slane %v488_v63, 1  ;;  %v497_v7 = vmax.f32 %v495_v62, %v496_v1  ;;  %v552_v11 = vsel %vm551_vm8, %v541_v3, %v550_v9 }
 0x1d3   :  { %v554_v16 = vsel %vm553_vm9, %v542_v13, %v552_v11 }
 0x1d4   :  { %v490_v8 = vmax.f32 %v488_v63, %v489_v4  ;;  %v505_v10 = vpack.c.bf16 %v497_v7, %v497_v7 }
 0x1d6   :  { %v504_v12 = vpack.c.bf16 %v490_v8, %v490_v8  ;;  %v544_v15 = vunpack.c.l.b16 %v505_v10 }
 0x1d8   :  { %v543_v14 = vunpack.c.l.b16 %v504_v12 }
 0x1da   :  { %v556_v17 = vsel %vm555_vm10, %v543_v14, %v554_v16 }
 0x1db   :  { %v558_v18 = vsel %vm557_vm11, %v544_v15, %v556_v17 }
 0x1dc   :  { %v559_v19 = vpack.c.b16 %v558_v18, %v558_v18 }
 0x1de   :  { %794 = vmatmul.mubr.bf16.vlgmr.msra.gmra.mxu0 %v559_v19 }
 0x29e   :  { %v643_v22 = vpop.f32.mrf.mxu0 }
 0x29f   :  { %v644_v23 = vadd.f32 %v696_v21, %v643_v22 }
 0x2a0   :  { %v795_v24 = vpop.f32.mrf.mxu0 }
 0x2a1   :  { %649 = vst [vmem:[#allocation5] sm:$0xff] %v644_v23 }
 0x2a2   :  { %v646_v25 = vpop.f32.mrf.mxu0 }
 0x2a3   :  { %856 = shalt.err (!%p853_p9)
}
 0x2a4   :  { %659 = dma.vmem_to_hbm [thread:$0]  %s657_s18, 128, %s1023_s7, [#allocation4]   ;;  %v796_v26 = vpop.f32.mrf.mxu0 }
 0x2a5   :  { %867 = dma.done.wait [#allocation4], 128  }
 0x2a6   :  { %868 = vsyncadd [#allocation4], 4294967168 }
 0x2a7   :  { %663 = vsyncpa [#allocation3], 1 }
 0x2a8   :  { %664 = vsyncpa [#allocation4], 1 }

</bundles_post_ra>
